<compile_context>
chip_gen: v6e
topology: v6e:2x2x1
jax: 0.10.0
libtpu: 0.0.40
codegen_flags: <defaults>
</compile_context>

<pallas_src>
import jax
import jax.numpy as jnp
from jax.experimental import pallas as pl
from jax.experimental.pallas import tpu as pltpu


def player_cnn_kernel(x_ref, cw_ref, cb_ref,
                      w1_ref, b1_ref, w2_ref, b2_ref, w3_ref, b3_ref,
                      out_ref):
    x = x_ref[...]                                   # [TB, 2P, F]
    cw = cw_ref[...]                                 # [1, F]   conv weight (flattened)
    cb = cb_ref[0, 0]                                # scalar conv bias (SMEM)

    # Conv2d(1,1,(1,F)) + bias == dot over feature axis per player row (both teams at once).
    feats = jnp.tanh(jnp.sum(x * cw[None, :, :], axis=-1) + cb)       # [TB, 2P]

    # fc1 over cat([home, away]) — single K=2P matmul against the unsplit weight.
    h1 = jnp.tanh(
        jnp.dot(feats, w1_ref[...], preferred_element_type=jnp.float32)
        + b1_ref[...])                                                # [TB, 64]
    # dropout: identity in eval mode

    h2 = jnp.tanh(
        jnp.dot(h1, w2_ref[...], preferred_element_type=jnp.float32)
        + b2_ref[...])                                                # [TB, 16]
    # dropout: identity in eval mode

    out_ref[...] = (
        jnp.dot(h2, w3_ref[...], preferred_element_type=jnp.float32)
        + b3_ref[...])                                                # [TB, 3]


def _round_up(n, m):
    return ((n + m - 1) // m) * m


def player_cnn_forward(x, params, *, batch_tile=512):
    """x: [B, 2, P, F] float32. params: (cw, cb, w1, b1, w2, b2, w3, b3)."""
    cw, cb, w1, b1, w2, b2, w3, b3 = params
    B, two, P, F = x.shape
    assert two == 2

    # Merge the team axis wrapper-side: [B, 2P, F] (free reshape; rows [0,P)=home, [P,2P)=away).
    x2 = x.reshape(B, 2 * P, F)

    # Batch tile: multiple of 8, capped at the (padded) batch so tiny test batches still work.
    tb = min(batch_tile, _round_up(B, 8))
    tb = _round_up(tb, 8)
    Bp = _round_up(B, tb)
    if Bp != B:
        x2 = jnp.pad(x2, ((0, Bp - B), (0, 0), (0, 0)))

    grid = (Bp // tb,)

    const = lambda i: (0, 0)  # weights/biases: same block every grid step -> VMEM-resident

    out = pl.pallas_call(
        player_cnn_kernel,
        out_shape=jax.ShapeDtypeStruct((Bp, 3), jnp.float32),
        grid=grid,
        in_specs=[
            pl.BlockSpec((tb, 2 * P, F), lambda i: (i, 0, 0)),               # x tile
            pl.BlockSpec((1, F), const),                                     # conv weight
            pl.BlockSpec(memory_space=pltpu.MemorySpace.SMEM),               # conv bias scalar
            pl.BlockSpec((2 * P, 64), const),                                # fc1 weight
            pl.BlockSpec((1, 64), const),                                    # fc1 bias
            pl.BlockSpec((64, 16), const),                                   # fc2 weight
            pl.BlockSpec((1, 16), const),                                    # fc2 bias
            pl.BlockSpec((16, 3), const),                                    # fc3 weight
            pl.BlockSpec((1, 3), const),                                     # fc3 bias
        ],
        out_specs=pl.BlockSpec((tb, 3), lambda i: (i, 0)),
        compiler_params=pltpu.CompilerParams(
            dimension_semantics=("parallel",),          # shard batch tiles across TCs (v7x)
            vmem_limit_bytes=32 * 1024 * 1024,          # explicit: fits v7x scoped VMEM
        ),
    )(x2, cw, cb, w1, b1, w2, b2, w3, b3)

    return out[:B]


def init_params(key, player_dim, feature_dim):
    ks = jax.random.split(key, 8)
    scale = 0.1
    cw = scale * jax.random.normal(ks[0], (1, feature_dim), jnp.float32)        # conv weight
    cb = scale * jax.random.normal(ks[1], (1, 1), jnp.float32)                  # conv bias
    w1 = scale * jax.random.normal(ks[2], (2 * player_dim, 64), jnp.float32)    # fc1 ([in, out])
    b1 = scale * jax.random.normal(ks[3], (1, 64), jnp.float32)
    w2 = scale * jax.random.normal(ks[4], (64, 16), jnp.float32)
    b2 = scale * jax.random.normal(ks[5], (1, 16), jnp.float32)
    w3 = scale * jax.random.normal(ks[6], (16, 3), jnp.float32)
    b3 = scale * jax.random.normal(ks[7], (1, 3), jnp.float32)
    return (cw, cb, w1, b1, w2, b2, w3, b3)


def reference_forward(x, params):
    # Pure-JAX reference mirroring the PyTorch graph (eval mode).
    cw, cb, w1, b1, w2, b2, w3, b3 = params
    home, away = x[:, 0], x[:, 1]
    hf = jnp.tanh(jnp.einsum('bpf,f->bp', home, cw[0]) + cb[0, 0])
    af = jnp.tanh(jnp.einsum('bpf,f->bp', away, cw[0]) + cb[0, 0])
    combined = jnp.concatenate([hf, af], axis=1)
    h1 = jnp.tanh(combined @ w1 + b1)
    h2 = jnp.tanh(h1 @ w2 + b2)
    return h2 @ w3 + b3


if __name__ == "__main__":
    B, player_dim, feature_dim = 8, 16, 32

    key = jax.random.PRNGKey(0)
    kx, kp = jax.random.split(key)
    x = jax.random.normal(kx, (B, 2, player_dim, feature_dim), jnp.float32)
    params = init_params(kp, player_dim, feature_dim)

    out = player_cnn_forward(x, params)
    out = jax.block_until_ready(out)

    ref = reference_forward(x, params)
    assert out.shape == (B, 3)
    assert jnp.allclose(out, ref, atol=1e-5, rtol=1e-5)

    print("KERNEL_OK")
</pallas_src>

<mosaic_0001>
module attributes {stable_mosaic.version = 11 : i64} {
  func.func @player_cnn_kernel(%arg0: i32, %arg1: memref<8x32x32xf32, #tpu.memory_space<vmem>>, %arg2: memref<1x32xf32, #tpu.memory_space<vmem>>, %arg3: memref<1x1xf32, #tpu.memory_space<smem>>, %arg4: memref<32x64xf32, #tpu.memory_space<vmem>>, %arg5: memref<1x64xf32, #tpu.memory_space<vmem>>, %arg6: memref<64x16xf32, #tpu.memory_space<vmem>>, %arg7: memref<1x16xf32, #tpu.memory_space<vmem>>, %arg8: memref<16x3xf32, #tpu.memory_space<vmem>>, %arg9: memref<1x3xf32, #tpu.memory_space<vmem>>, %arg10: memref<8x3xf32, #tpu.memory_space<vmem>>) attributes {dimension_semantics = [#tpu.dimension_semantics<parallel>], iteration_bounds = array<i64: 1>, scalar_prefetch = 0 : i64, scratch_operands = 0 : i64, tpu.core_type = #tpu.core_type<tc>, window_params = [{transform_indices = @transform_0, window_bounds = array<i64: 8, 32, 32>}, {pipeline_mode = #tpu.pipeline_mode<synchronous>, transform_indices = @transform_1, window_bounds = array<i64: 1, 32>}, {transform_indices = @transform_2, window_bounds = array<i64: 1, 1>}, {pipeline_mode = #tpu.pipeline_mode<synchronous>, transform_indices = @transform_3, window_bounds = array<i64: 32, 64>}, {pipeline_mode = #tpu.pipeline_mode<synchronous>, transform_indices = @transform_4, window_bounds = array<i64: 1, 64>}, {pipeline_mode = #tpu.pipeline_mode<synchronous>, transform_indices = @transform_5, window_bounds = array<i64: 64, 16>}, {pipeline_mode = #tpu.pipeline_mode<synchronous>, transform_indices = @transform_6, window_bounds = array<i64: 1, 16>}, {pipeline_mode = #tpu.pipeline_mode<synchronous>, transform_indices = @transform_7, window_bounds = array<i64: 16, 3>}, {pipeline_mode = #tpu.pipeline_mode<synchronous>, transform_indices = @transform_8, window_bounds = array<i64: 1, 3>}, {transform_indices = @transform_9, window_bounds = array<i64: 8, 3>}]} {
    %c0 = arith.constant 0 : index
    %c0_0 = arith.constant 0 : index
    %c0_1 = arith.constant 0 : index
    %0 = vector.load %arg1[%c0, %c0_0, %c0_1] : memref<8x32x32xf32, #tpu.memory_space<vmem>>, vector<8x32x32xf32>
    %c0_2 = arith.constant 0 : index
    %c0_3 = arith.constant 0 : index
    %1 = vector.load %arg2[%c0_2, %c0_3] : memref<1x32xf32, #tpu.memory_space<vmem>>, vector<1x32xf32>
    %c0_4 = arith.constant 0 : index
    %c0_5 = arith.constant 0 : index
    %2 = memref.load %arg3[%c0_4, %c0_5] : memref<1x1xf32, #tpu.memory_space<smem>>
    %3 = vector.shape_cast %1 : vector<1x32xf32> to vector<1x1x32xf32>
    %4 = vector.broadcast %3 : vector<1x1x32xf32> to vector<8x32x32xf32>
    %5 = arith.mulf %0, %4 : vector<8x32x32xf32>
    %cst = arith.constant dense<0.000000e+00> : vector<8x32xf32>
    %6 = vector.multi_reduction <add>, %5, %cst [2] : vector<8x32x32xf32> to vector<8x32xf32>
    %7 = vector.broadcast %2 : f32 to vector<8x32xf32>
    %8 = arith.addf %6, %7 : vector<8x32xf32>
    %9 = math.tanh %8 : vector<8x32xf32>
    %c0_6 = arith.constant 0 : index
    %c0_7 = arith.constant 0 : index
    %10 = vector.load %arg4[%c0_6, %c0_7] : memref<32x64xf32, #tpu.memory_space<vmem>>, vector<32x64xf32>
    %cst_8 = arith.constant dense<0.000000e+00> : vector<8x64xf32>
    %11 = tpu.matmul %9, %10, %cst_8 {dimension_numbers = #tpu.dot_dimension_numbers<[1], [0], [0], [1], [0, 0, 1, 1], [], []>} : vector<8x32xf32>, vector<32x64xf32>, vector<8x64xf32> -> vector<8x64xf32>
    %c0_9 = arith.constant 0 : index
    %c0_10 = arith.constant 0 : index
    %12 = vector.load %arg5[%c0_9, %c0_10] : memref<1x64xf32, #tpu.memory_space<vmem>>, vector<1x64xf32>
    %13 = vector.broadcast %12 : vector<1x64xf32> to vector<8x64xf32>
    %14 = arith.addf %11, %13 : vector<8x64xf32>
    %15 = math.tanh %14 : vector<8x64xf32>
    %c0_11 = arith.constant 0 : index
    %c0_12 = arith.constant 0 : index
    %16 = vector.load %arg6[%c0_11, %c0_12] : memref<64x16xf32, #tpu.memory_space<vmem>>, vector<64x16xf32>
    %cst_13 = arith.constant dense<0.000000e+00> : vector<8x16xf32>
    %17 = tpu.matmul %15, %16, %cst_13 {dimension_numbers = #tpu.dot_dimension_numbers<[1], [0], [0], [1], [0, 0, 1, 1], [], []>} : vector<8x64xf32>, vector<64x16xf32>, vector<8x16xf32> -> vector<8x16xf32>
    %c0_14 = arith.constant 0 : index
    %c0_15 = arith.constant 0 : index
    %18 = vector.load %arg7[%c0_14, %c0_15] : memref<1x16xf32, #tpu.memory_space<vmem>>, vector<1x16xf32>
    %19 = vector.broadcast %18 : vector<1x16xf32> to vector<8x16xf32>
    %20 = arith.addf %17, %19 : vector<8x16xf32>
    %21 = math.tanh %20 : vector<8x16xf32>
    %c0_16 = arith.constant 0 : index
    %c0_17 = arith.constant 0 : index
    %22 = vector.load %arg8[%c0_16, %c0_17] : memref<16x3xf32, #tpu.memory_space<vmem>>, vector<16x3xf32>
    %cst_18 = arith.constant dense<0.000000e+00> : vector<8x3xf32>
    %23 = tpu.matmul %21, %22, %cst_18 {dimension_numbers = #tpu.dot_dimension_numbers<[1], [0], [0], [1], [0, 0, 1, 1], [], []>} : vector<8x16xf32>, vector<16x3xf32>, vector<8x3xf32> -> vector<8x3xf32>
    %c0_19 = arith.constant 0 : index
    %c0_20 = arith.constant 0 : index
    %24 = vector.load %arg9[%c0_19, %c0_20] : memref<1x3xf32, #tpu.memory_space<vmem>>, vector<1x3xf32>
    %25 = vector.broadcast %24 : vector<1x3xf32> to vector<8x3xf32>
    %26 = arith.addf %23, %25 : vector<8x3xf32>
    %c0_21 = arith.constant 0 : index
    %c0_22 = arith.constant 0 : index
    %27 = vector.load %arg10[%c0_21, %c0_22] : memref<8x3xf32, #tpu.memory_space<vmem>>, vector<8x3xf32>
    tpu.vector_store %arg10[%c0_21, %c0_22], %26 {strides = array<i32>} : memref<8x3xf32, #tpu.memory_space<vmem>>, vector<8x3xf32>,
    return
  }
  func.func @transform_0(%arg0: i32) -> (i32, i32, i32) {
    %c0_i32 = arith.constant 0 : i32
    %c0_i32_0 = arith.constant 0 : i32
    %c0_i32_1 = arith.constant 0 : i32
    return %arg0, %c0_i32, %c0_i32_0 : i32, i32, i32
  }
  func.func @transform_1(%arg0: i32) -> (i32, i32) {
    %c0_i32 = arith.constant 0 : i32
    %c0_i32_0 = arith.constant 0 : i32
    %c0_i32_1 = arith.constant 0 : i32
    return %c0_i32, %c0_i32_0 : i32, i32
  }
  func.func @transform_2(%arg0: i32) -> (i32, i32) {
    %c0_i32 = arith.constant 0 : i32
    %c0_i32_0 = arith.constant 0 : i32
    %c0_i32_1 = arith.constant 0 : i32
    return %c0_i32, %c0_i32_0 : i32, i32
  }
  func.func @transform_3(%arg0: i32) -> (i32, i32) {
    %c0_i32 = arith.constant 0 : i32
    %c0_i32_0 = arith.constant 0 : i32
    %c0_i32_1 = arith.constant 0 : i32
    return %c0_i32, %c0_i32_0 : i32, i32
  }
  func.func @transform_4(%arg0: i32) -> (i32, i32) {
    %c0_i32 = arith.constant 0 : i32
    %c0_i32_0 = arith.constant 0 : i32
    %c0_i32_1 = arith.constant 0 : i32
    return %c0_i32, %c0_i32_0 : i32, i32
  }
  func.func @transform_5(%arg0: i32) -> (i32, i32) {
    %c0_i32 = arith.constant 0 : i32
    %c0_i32_0 = arith.constant 0 : i32
    %c0_i32_1 = arith.constant 0 : i32
    return %c0_i32, %c0_i32_0 : i32, i32
  }
  func.func @transform_6(%arg0: i32) -> (i32, i32) {
    %c0_i32 = arith.constant 0 : i32
    %c0_i32_0 = arith.constant 0 : i32
    %c0_i32_1 = arith.constant 0 : i32
    return %c0_i32, %c0_i32_0 : i32, i32
  }
  func.func @transform_7(%arg0: i32) -> (i32, i32) {
    %c0_i32 = arith.constant 0 : i32
    %c0_i32_0 = arith.constant 0 : i32
    %c0_i32_1 = arith.constant 0 : i32
    return %c0_i32, %c0_i32_0 : i32, i32
  }
  func.func @transform_8(%arg0: i32) -> (i32, i32) {
    %c0_i32 = arith.constant 0 : i32
    %c0_i32_0 = arith.constant 0 : i32
    %c0_i32_1 = arith.constant 0 : i32
    return %c0_i32, %c0_i32_0 : i32, i32
  }
  func.func @transform_9(%arg0: i32) -> (i32, i32) {
    %c0_i32 = arith.constant 0 : i32
    %c0_i32_0 = arith.constant 0 : i32
    return %arg0, %c0_i32 : i32, i32
  }
}

</mosaic_0001>

<bundles_post_ra>
// kernel: tpu_custom_call.1
= control target key start
LH: loop header
LB: loop body
LE: loop exit
PB: predicated region body
PF: predicated region fallthrough
CT: control target
= control target key end

     0   :  { %15 = vsyncpa [#allocation4], 0  ;;  %s907_s30 = smov [#allocation3]   ;;  %s1272_s0 = inlined_call_operand.hbm [shape: f32[8,32,32], index: 0, kind: input, shape index: {}]   ;;  %s1273_s1 = inlined_call_operand.vmem [shape: f32[1,32], index: 1, kind: input, shape index: {}]   ;;  %s1274_s2 = inlined_call_operand.<no memory space> [shape: f32[1,1], index: 2, kind: input, shape index: {}]   ;;  %s1275_s3 = inlined_call_operand.vmem [shape: f32[32,64], index: 3, kind: input, shape index: {}]   ;;  %s1276_s4 = inlined_call_operand.vmem [shape: f32[1,64], index: 4, kind: input, shape index: {}]   ;;  %s1277_s5 = inlined_call_operand.vmem [shape: f32[64,16], index: 5, kind: input, shape index: {}]   ;;  %s1278_s6 = inlined_call_operand.vmem [shape: f32[1,16], index: 6, kind: input, shape index: {}]   ;;  %s1279_s7 = inlined_call_operand.vmem [shape: f32[16,3], index: 7, kind: input, shape index: {}]   ;;  %s1280_s8 = inlined_call_operand.vmem [shape: f32[1,3], index: 8, kind: input, shape index: {}]   ;;  %s1281_s9 = inlined_call_operand.vmem [shape: f32[8,3], index: 9, kind: output, shape index: {}]  }
   0x1   :  { %s21_s10 = sshll.u32 %s907_s30, 4  ;;  %s22_s10 = int_to_ptr.vmem [resolvable:$true] %s21_s10 }
   0x2   :  { %s893_s11 = scalar_lea.vmem %s22_s10, 4096  ;;  %p898_p1 = scmp.lt.s32.totalorder %s22_s10, %s22_s10 }
   0x3   :  { %p894_p0 = scmp.ne.s32.totalorder %s22_s10, %s893_s11  ;;  %p899_p2 = scmp.lt.s32.totalorder %s893_s11, %s893_s11 }
   0x5   :  { %p900_p3 = por %p899_p2, %p898_p1 }
   0x7   :  { %p901_p4 = pnand %p900_p3, %p894_p0 }
   0x9   :  { %904 = shalt.err (!%p901_p4)
}
   0xa   :  { %s908_s12 = smov 128   ;;  %s909_s13 = smov 8  }
   0xb   :  { %27 = dma.hbm_to_vmem [thread:$0]  %s1272_s0, 4096, %s22_s10, [#allocation4], %s908_s12, %s908_s12, %s909_s13  }
   0xc   :  { %905 = dma.done.wait [#allocation4], 4096  }
   0xd   :  { %906 = vsyncadd [#allocation4], 4294963200  ;;  %v51_v0 = vld [vmem:[#allocation3 + $0x20] sm:$0xff]  ;;  %vm119_vm0 = vcmask 261120   ;;  %v52_v5 = vld [vmem:[#allocation3 + $0x28] sm:$0xff]  ;;  %vm911_vm1 = vmmov 0  }
   0xe   :  { %v968_v1 = vld [vmem:[%s1273_s1] ss:$0 sm:$0xff]  ;;  %v48_v6 = vld [vmem:[#allocation3 + $0x8] sm:$0xff]  ;;  %v53_v9 = vld [vmem:[#allocation3 + $0x30] sm:$0xff]  ;;  %vm335_vm2 = vcmask 130112   ;;  %vm342_vm3 = vcmask 195712  }
   0xf   :  { %v47_v2 = vld [vmem:[#allocation3] sm:$0xff]  ;;  %v91_v3 = vmul.f32 %v968_v1, %v51_v0  ;;  %v92_v7 = vmul.f32 %v968_v1, %v52_v5  ;;  %v88_v8 = vmul.f32 %v968_v1, %v48_v6  ;;  %v49_v10 = vld [vmem:[#allocation3 + $0x10] sm:$0xff]  ;;  %v93_v15 = vmul.f32 %v968_v1, %v53_v9  ;;  %v56_v17 = vld [vmem:[#allocation3 + $0x48] sm:$0xff] }
  0x10   :  { %v87_v4 = vmul.f32 %v968_v1, %v47_v2  ;;  %v89_v16 = vmul.f32 %v968_v1, %v49_v10  ;;  %v55_v18 = vld [vmem:[#allocation3 + $0x40] sm:$0xff]  ;;  %v96_v21 = vmul.f32 %v968_v1, %v56_v17  ;;  %v54_v23 = vld [vmem:[#allocation3 + $0x38] sm:$0xff]  ;;  %v57_v30 = vld [vmem:[#allocation3 + $0x50] sm:$0xff]  ;;  %vm349_vm4 = vcmask 261312  }
  0x11   :  { %v132_v11 = vsel %vm119_vm0, %v91_v3, 0.0  ;;  %v135_v13 = vsel %vm119_vm0, %v92_v7, 0.0  ;;  %v123_v14 = vsel %vm119_vm0, %v88_v8, 0.0  ;;  %v138_v19 = vsel %vm119_vm0, %v93_v15, 0.0  ;;  %v50_v24 = vld [vmem:[#allocation3 + $0x18] sm:$0xff]  ;;  %v59_v29 = vld [vmem:[#allocation3 + $0x60] sm:$0xff] }
  0x12   :  { %v120_v12 = vsel %vm119_vm0, %v87_v4, 0.0  ;;  %133 = vadd.xlane.f32.xlu1 %v132_v11  ;;  %v126_v20 = vsel %vm119_vm0, %v89_v16, 0.0  ;;  %v95_v22 = vmul.f32 %v968_v1, %v55_v18  ;;  %v147_v25 = vsel %vm119_vm0, %v96_v21, 0.0  ;;  %v58_v35 = vld [vmem:[#allocation3 + $0x58] sm:$0xff]  ;;  %v60_v36 = vld [vmem:[#allocation3 + $0x68] sm:$0xff]  ;;  %v63_v41 = vld [vmem:[#allocation3 + $0x80] sm:$0xff] }
  0x13   :  { %121 = vadd.xlane.f32.xlu0 %v120_v12  ;;  %v94_v27 = vmul.f32 %v968_v1, %v54_v23  ;;  %v90_v28 = vmul.f32 %v968_v1, %v50_v24  ;;  %v99_v33 = vmul.f32 %v968_v1, %v59_v29  ;;  %v97_v34 = vmul.f32 %v968_v1, %v57_v30  ;;  %v61_v42 = vld [vmem:[#allocation3 + $0x70] sm:$0xff]  ;;  %v62_v47 = vld [vmem:[#allocation3 + $0x78] sm:$0xff]  ;;  %v64_v48 = vld [vmem:[#allocation3 + $0x88] sm:$0xff] }
  0x14   :  { %v144_v26 = vsel %vm119_vm0, %v95_v22, 0.0  ;;  %v98_v39 = vmul.f32 %v968_v1, %v58_v35  ;;  %v100_v40 = vmul.f32 %v968_v1, %v60_v36  ;;  %v103_v45 = vmul.f32 %v968_v1, %v63_v41  ;;  %v67_v53 = vld [vmem:[#allocation3 + $0xa0] sm:$0xff]  ;;  %v65_v54 = vld [vmem:[#allocation3 + $0x90] sm:$0xff]  ;;  %v66_v59 = vld [vmem:[#allocation3 + $0x98] sm:$0xff] }
  0x15   :  { %v141_v31 = vsel %vm119_vm0, %v94_v27, 0.0  ;;  %v129_v32 = vsel %vm119_vm0, %v90_v28, 0.0  ;;  %v156_v37 = vsel %vm119_vm0, %v99_v33, 0.0  ;;  %v150_v38 = vsel %vm119_vm0, %v97_v34, 0.0  ;;  %v68_v60 = vld [vmem:[#allocation3 + $0xa8] sm:$0xff]  ;;  %v71_v2 = vld [vmem:[#allocation3 + $0xc0] sm:$0xff] }
  0x16   :  { %136 = vadd.xlane.f32.xlu1 %v135_v13  ;;  %v153_v43 = vsel %vm119_vm0, %v98_v39, 0.0  ;;  %v159_v44 = vsel %vm119_vm0, %v100_v40, 0.0  ;;  %v101_v46 = vmul.f32 %v968_v1, %v61_v42  ;;  %v168_v49 = vsel %vm119_vm0, %v103_v45, 0.0  ;;  %v69_v3 = vld [vmem:[#allocation3 + $0xb0] sm:$0xff]  ;;  %v70_v8 = vld [vmem:[#allocation3 + $0xb8] sm:$0xff]  ;;  %v72_v9 = vld [vmem:[#allocation3 + $0xc8] sm:$0xff] }
  0x17   :  { %124 = vadd.xlane.f32.xlu0 %v123_v14  ;;  %v102_v51 = vmul.f32 %v968_v1, %v62_v47  ;;  %v104_v52 = vmul.f32 %v968_v1, %v64_v48  ;;  %v107_v57 = vmul.f32 %v968_v1, %v67_v53  ;;  %v105_v58 = vmul.f32 %v968_v1, %v65_v54  ;;  %v75_v14 = vld [vmem:[#allocation3 + $0xe0] sm:$0xff]  ;;  %v73_v15 = vld [vmem:[#allocation3 + $0xd0] sm:$0xff]  ;;  %v76_v21 = vld [vmem:[#allocation3 + $0xe8] sm:$0xff] }
  0x18   :  { %v162_v50 = vsel %vm119_vm0, %v101_v46, 0.0  ;;  %v106_v63 = vmul.f32 %v968_v1, %v66_v59  ;;  %v108_v0 = vmul.f32 %v968_v1, %v68_v60  ;;  %v111_v6 = vmul.f32 %v968_v1, %v71_v2  ;;  %v78_v27 = vld [vmem:[#allocation3 + $0xf8] sm:$0xff]  ;;  %v283_v36 = vld [vmem:[%s1275_s3 + $0x10] sm:$0xff] }
  0x19   :  { %v165_v55 = vsel %vm119_vm0, %v102_v51, 0.0  ;;  %v171_v56 = vsel %vm119_vm0, %v104_v52, 0.0  ;;  %v180_v61 = vsel %vm119_vm0, %v107_v57, 0.0  ;;  %v174_v62 = vsel %vm119_vm0, %v105_v58, 0.0  ;;  %v284_v34 = vld [vmem:[%s1275_s3 + $0x18] sm:$0xff] }
  0x1a   :  { %139 = vadd.xlane.f32.xlu1 %v138_v19  ;;  %v177_v4 = vsel %vm119_vm0, %v106_v63, 0.0  ;;  %v183_v5 = vsel %vm119_vm0, %v108_v0, 0.0  ;;  %v109_v7 = vmul.f32 %v968_v1, %v69_v3  ;;  %v192_v10 = vsel %vm119_vm0, %v111_v6, 0.0 }
  0x1b   :  { %127 = vadd.xlane.f32.xlu0 %v126_v20  ;;  %v110_v12 = vmul.f32 %v968_v1, %v70_v8  ;;  %v112_v13 = vmul.f32 %v968_v1, %v72_v9  ;;  %v115_v18 = vmul.f32 %v968_v1, %v75_v14  ;;  %v113_v19 = vmul.f32 %v968_v1, %v73_v15  ;;  %v74_v20 = vld [vmem:[#allocation3 + $0xd8] sm:$0xff] }
  0x1c   :  { %v186_v11 = vsel %vm119_vm0, %v109_v7, 0.0  ;;  %v114_v24 = vmul.f32 %v968_v1, %v74_v20  ;;  %v910_v35 = vmov 0.0   ;;  %vm484_vm5 = vcmask 1041409  }
  0x1d   :  { %v189_v16 = vsel %vm119_vm0, %v110_v12, 0.0  ;;  %v195_v17 = vsel %vm119_vm0, %v112_v13, 0.0  ;;  %v204_v22 = vsel %vm119_vm0, %v115_v18, 0.0  ;;  %v198_v23 = vsel %vm119_vm0, %v113_v19, 0.0  ;;  %775 = vmatprep.subr.mxu0 %v910_v35  ;;  %783 = vmatprep.mubr.msk.f32.mxu0 %vm911_vm1, %v910_v35 }
  0x1e   :  { %148 = vadd.xlane.f32.xlu1 %v147_v25  ;;  %v116_v25 = vmul.f32 %v968_v1, %v76_v21  ;;  %v201_v28 = vsel %vm119_vm0, %v114_v24, 0.0  ;;  %776 = vmatpush3.msra.mxu0 %v284_v34  ;;  %vm486_vm6 = vcmask 1042434   ;;  %vm488_vm7 = vcmask 1043459  }
  0x1f   :  { %145 = vadd.xlane.f32.xlu0 %v144_v26  ;;  %v77_v26 = vld [vmem:[#allocation3 + $0xf0] sm:$0xff]  ;;  %786 = vmatprep.subr.mxu1 %v910_v35  ;;  %vm490_vm8 = vcmask 1044484   ;;  %vm492_vm9 = vcmask 1045509   ;;  %vm494_vm10 = vcmask 1046534   ;;  %vm496_vm11 = vcmask 1047559  }
  0x20   :  { %v207_v29 = vsel %vm119_vm0, %v116_v25, 0.0  ;;  %v117_v30 = vmul.f32 %v968_v1, %v77_v26  ;;  %777 = vmatprep.subr.mxu0 %v910_v35  ;;  %802 = vmatprep.mubr.msk.f32.mxu1 %vm911_vm1, %v910_v35  ;;  %v324_v26 = vlaneseq  ;;  %vm586_vm12 = vcmask 523264  }
  0x21   :  { %778 = vmatpush3.msra.mxu0 %v283_v36  ;;  %vm670_vm13 = vcmask 130048   ;;  %vm744_vm14 = vcmask 23552  }
  0x22   :  { %142 = vadd.xlane.f32.xlu1 %v141_v31  ;;  %v118_v31 = vmul.f32 %v968_v1, %v78_v27  ;;  %v282_v1 = vld [vmem:[%s1275_s3 + $0x8] sm:$0xff]  ;;  %779 = vmatprep.subr.mxu0 %v910_v35 }
  0x23   :  { %130 = vadd.xlane.f32.xlu0 %v129_v32  ;;  %v210_v32 = vsel %vm119_vm0, %v117_v30, 0.0  ;;  %780 = vmatpush3.msra.mxu0 %v282_v1 }
  0x24   :  { %v213_v33 = vsel %vm119_vm0, %v118_v31, 0.0  ;;  %781 = vmatprep.subr.mxu0 %v910_v35 }
  0x26   :  { %157 = vadd.xlane.f32.xlu1 %v156_v37  ;;  %v281_v37 = vld [vmem:[%s1275_s3] sm:$0xff] }
  0x27   :  { %151 = vadd.xlane.f32.xlu0 %v150_v38  ;;  %782 = vmatpush3.msra.mxu0 %v281_v37  ;;  %v325_v37 = vand.u32 127, %v324_v26 }
  0x28   :  { %805 = vmatprep.subr.mxu0 %v910_v35 }
  0x2a   :  { %154 = vadd.xlane.f32.xlu1 %v153_v43 }
  0x2b   :  { %160 = vadd.xlane.f32.xlu0 %v159_v44 }
  0x2e   :  { %169 = vadd.xlane.f32.xlu1 %v168_v49 }
  0x2f   :  { %163 = vadd.xlane.f32.xlu0 %v162_v50  ;;  %v1059_v50 = vstv %s1274_s2 }
  0x32   :  { %166 = vadd.xlane.f32.xlu1 %v165_v55 }
  0x33   :  { %172 = vadd.xlane.f32.xlu0 %v171_v56 }
  0x36   :  { %181 = vadd.xlane.f32.xlu1 %v180_v61 }
  0x37   :  { %175 = vadd.xlane.f32.xlu0 %v174_v62 }
  0x3a   :  { %178 = vadd.xlane.f32.xlu1 %v177_v4 }
  0x3b   :  { %184 = vadd.xlane.f32.xlu0 %v183_v5 }
  0x3e   :  { %193 = vadd.xlane.f32.xlu1 %v192_v10 }
  0x3f   :  { %187 = vadd.xlane.f32.xlu0 %v186_v11 }
  0x42   :  { %190 = vadd.xlane.f32.xlu1 %v189_v16 }
  0x43   :  { %196 = vadd.xlane.f32.xlu0 %v195_v17 }
  0x46   :  { %205 = vadd.xlane.f32.xlu1 %v204_v22 }
  0x47   :  { %199 = vadd.xlane.f32.xlu0 %v198_v23 }
  0x4a   :  { %202 = vadd.xlane.f32.xlu1 %v201_v28 }
  0x4b   :  { %208 = vadd.xlane.f32.xlu0 %v207_v29 }
  0x4e   :  { %214 = vadd.xlane.f32.xlu1 %v213_v33 }
  0x4f   :  { %211 = vadd.xlane.f32.xlu0 %v210_v32 }
  0x9b   :  { %v134_v38 = vpop.xlane.xlu1 %133 }
  0x9c   :  { %v122_v39 = vpop.xlane.xlu0 %121  ;;  %v221_v53 = vadd.f32 %v1059_v50, %v134_v38 }
  0x9d   :  { %v217_v54 = vadd.f32 %v1059_v50, %v122_v39 }
  0x9e   :  { %817 = vtanh.f32 %v221_v53 }
  0x9f   :  { %v137_v40 = vpop.xlane.xlu1 %136  ;;  %819 = vtanh.f32 %v217_v54 }
  0xa0   :  { %v125_v41 = vpop.xlane.xlu0 %124  ;;  %v222_v57 = vadd.f32 %v1059_v50, %v137_v40 }
  0xa1   :  { %v218_v58 = vadd.f32 %v1059_v50, %v125_v41 }
  0xa2   :  { %821 = vtanh.f32 %v222_v57 }
  0xa3   :  { %v140_v42 = vpop.xlane.xlu1 %139  ;;  %823 = vtanh.f32 %v218_v58 }
  0xa4   :  { %v128_v43 = vpop.xlane.xlu0 %127  ;;  %v223_v59 = vadd.f32 %v1059_v50, %v140_v42 }
  0xa5   :  { %v219_v60 = vadd.f32 %v1059_v50, %v128_v43 }
  0xa6   :  { %825 = vtanh.f32 %v223_v59 }
  0xa7   :  { %v149_v44 = vpop.xlane.xlu1 %148  ;;  %827 = vtanh.f32 %v219_v60 }
  0xa8   :  { %v146_v45 = vpop.xlane.xlu0 %145  ;;  %v226_v63 = vadd.f32 %v1059_v50, %v149_v44  ;;  %v327_v44 = vshrl.u32 %v324_v26, 7 }
  0xa9   :  { %v225_v0 = vadd.f32 %v1059_v50, %v146_v45  ;;  %v330_v45 = vadd.s32 4294967288, %v325_v37 }
  0xaa   :  { %829 = vtanh.f32 %v226_v63  ;;  %v1121_v58 = vsub.s32 %v325_v37, %v327_v44 }
  0xab   :  { %v143_v46 = vpop.xlane.xlu1 %142  ;;  %831 = vtanh.f32 %v225_v0  ;;  %v1078_v15 = vpop.eup %817  ;;  %v1123_v59 = vsub.s32 %v330_v45, %v327_v44 }
  0xac   :  { %v131_v47 = vpop.xlane.xlu0 %130  ;;  %v224_v2 = vadd.f32 %v1059_v50, %v143_v46  ;;  %v1081_v19 = vpop.eup %819 }
  0xad   :  { %v220_v3 = vadd.f32 %v1059_v50, %v131_v47 }
  0xae   :  { %833 = vtanh.f32 %v224_v2 }
  0xaf   :  { %v158_v48 = vpop.xlane.xlu1 %157  ;;  %835 = vtanh.f32 %v220_v3  ;;  %v1084_v21 = vpop.eup %821 }
  0xb0   :  { %v152_v49 = vpop.xlane.xlu0 %151  ;;  %v229_v6 = vadd.f32 %v1059_v50, %v158_v48  ;;  %v1087_v23 = vpop.eup %823  ;;  %v337_v48 = vadd.s32 4294967280, %v325_v37 }
  0xb1   :  { %v227_v7 = vadd.f32 %v1059_v50, %v152_v49 }
  0xb2   :  { %837 = vtanh.f32 %v229_v6 }
  0xb3   :  { %v155_v51 = vpop.xlane.xlu1 %154  ;;  %839 = vtanh.f32 %v227_v7  ;;  %v1090_v25 = vpop.eup %825  ;;  %v354_v7 = vrot.slane %v1078_v15, %v1121_v58 }
  0xb4   :  { %v161_v52 = vpop.xlane.xlu0 %160  ;;  %v228_v8 = vadd.f32 %v1059_v50, %v155_v51  ;;  %v1093_v30 = vpop.eup %827  ;;  %v344_v51 = vadd.s32 4294967272, %v325_v37 }
  0xb5   :  { %v230_v9 = vadd.f32 %v1059_v50, %v161_v52 }
  0xb6   :  { %841 = vtanh.f32 %v228_v8  ;;  %v1131_v63 = vsub.s32 %v344_v51, %v327_v44  ;;  %v329_v8 = vrot.slane %v1081_v19, %v1121_v58 }
  0xb7   :  { %v170_v55 = vpop.xlane.xlu1 %169  ;;  %843 = vtanh.f32 %v230_v9  ;;  %v1096_v32 = vpop.eup %829  ;;  %v358_v9 = vrot.slane %v1084_v21, %v1123_v59 }
  0xb8   :  { %v164_v56 = vpop.xlane.xlu0 %163  ;;  %v233_v12 = vadd.f32 %v1059_v50, %v170_v55  ;;  %v1099_v34 = vpop.eup %831 }
  0xb9   :  { %v231_v13 = vadd.f32 %v1059_v50, %v164_v56  ;;  %v373_v15 = vrot.slane %v1099_v34, %v1121_v58  ;;  %v359_v21 = vsel %vm335_vm2, %v358_v9, %v354_v7 }
  0xba   :  { %845 = vtanh.f32 %v233_v12 }
  0xbb   :  { %v167_v61 = vpop.xlane.xlu1 %166  ;;  %847 = vtanh.f32 %v231_v13  ;;  %v1102_v1 = vpop.eup %833  ;;  %v377_v13 = vrot.slane %v1096_v32, %v1123_v59 }
  0xbc   :  { %v173_v62 = vpop.xlane.xlu0 %172  ;;  %v232_v14 = vadd.f32 %v1059_v50, %v167_v61  ;;  %v1104_v40 = vpop.eup %835  ;;  %v1127_v61 = vsub.s32 %v337_v48, %v327_v44 }
  0xbd   :  { %v234_v16 = vadd.f32 %v1059_v50, %v173_v62 }
  0xbe   :  { %849 = vtanh.f32 %v232_v14  ;;  %v363_v12 = vrot.slane %v1090_v25, %v1127_v61 }
  0xbf   :  { %v182_v4 = vpop.xlane.xlu1 %181  ;;  %851 = vtanh.f32 %v234_v16  ;;  %v1108_v43 = vpop.eup %837  ;;  %v368_v16 = vrot.slane %v1102_v1, %v1131_v63 }
  0xc0   :  { %v176_v5 = vpop.xlane.xlu0 %175  ;;  %v237_v20 = vadd.f32 %v1059_v50, %v182_v4  ;;  %v1111_v47 = vpop.eup %839  ;;  %v364_v25 = vsel %vm342_vm3, %v363_v12, %v359_v21  ;;  %v576_v21 = vld [vmem:[%s1277_s5 + $0x28] sm:$0xff] }
  0xc1   :  { %v235_v22 = vadd.f32 %v1059_v50, %v176_v5  ;;  %v382_v19 = vrot.slane %v1111_v47, %v1127_v61 }
  0xc2   :  { %853 = vtanh.f32 %v237_v20 }
  0xc3   :  { %v179_v10 = vpop.xlane.xlu1 %178  ;;  %855 = vtanh.f32 %v235_v22  ;;  %v1113_v49 = vpop.eup %841 }
  0xc4   :  { %v185_v11 = vpop.xlane.xlu0 %184  ;;  %v236_v24 = vadd.f32 %v1059_v50, %v179_v10  ;;  %v1115_v54 = vpop.eup %843  ;;  %v334_v10 = vrot.slane %v1087_v23, %v1123_v59  ;;  %v387_v23 = vrot.slane %v1113_v49, %v1131_v63 }
  0xc5   :  { %v238_v27 = vadd.f32 %v1059_v50, %v185_v11 }
  0xc6   :  { %857 = vtanh.f32 %v236_v24  ;;  %v336_v22 = vsel %vm335_vm2, %v334_v10, %v329_v8 }
  0xc7   :  { %v194_v17 = vpop.xlane.xlu1 %193  ;;  %859 = vtanh.f32 %v238_v27  ;;  %v1119_v57 = vpop.eup %845 }
  0xc8   :  { %v188_v18 = vpop.xlane.xlu0 %187  ;;  %v241_v41 = vadd.f32 %v1059_v50, %v194_v17  ;;  %v1125_v60 = vpop.eup %847  ;;  %v348_v17 = vrot.slane %v1104_v40, %v1131_v63 }
  0xc9   :  { %v239_v31 = vadd.f32 %v1059_v50, %v188_v18  ;;  %v401_v34 = vrot.slane %v1125_v60, %v1127_v61 }
  0xcb   :  { %v191_v28 = vpop.xlane.xlu1 %190  ;;  %861 = vtanh.f32 %v239_v31  ;;  %v1129_v62 = vpop.eup %849  ;;  %v369_v31 = vsel %vm349_vm4, %v368_v16, %v364_v25  ;;  %v572_v25 = vld [vmem:[%s1277_s5 + $0x8] sm:$0xff] }
  0xcc   :  { %v197_v29 = vpop.xlane.xlu0 %196  ;;  %v240_v33 = vadd.f32 %v1059_v50, %v191_v28  ;;  %v1133_v3 = vpop.eup %851  ;;  %v378_v28 = vsel %vm335_vm2, %v377_v13, %v373_v15 }
  0xcd   :  { %v242_v36 = vadd.f32 %v1059_v50, %v197_v29  ;;  %v396_v29 = vrot.slane %v1115_v54, %v1123_v59  ;;  %v383_v1 = vsel %vm342_vm3, %v382_v19, %v378_v28 }
  0xce   :  { %863 = vtanh.f32 %v240_v33  ;;  %v392_v33 = vrot.slane %v1108_v43, %v1121_v58  ;;  %v411_v43 = vrot.slane %v1119_v57, %v1121_v58 }
  0xcf   :  { %v206_v38 = vpop.xlane.xlu1 %205  ;;  %865 = vtanh.f32 %v242_v36  ;;  %v1137_v6 = vpop.eup %853  ;;  %v415_v36 = vrot.slane %v1133_v3, %v1123_v59 }
  0xd0   :  { %v200_v39 = vpop.xlane.xlu0 %199  ;;  %v245_v46 = vadd.f32 %v1059_v50, %v206_v38  ;;  %v856_v11 = vpop.eup %855  ;;  %v406_v38 = vrot.slane %v1129_v62, %v1131_v63  ;;  %v430_v48 = vrot.slane %v1137_v6, %v1121_v58  ;;  %v397_v49 = vsel %vm335_vm2, %v396_v29, %v392_v33  ;;  %v661_v33 = vld [vmem:[%s1279_s7] sm:$0xff] }
  0xd1   :  { %v243_v42 = vadd.f32 %v1059_v50, %v200_v39  ;;  %v420_v39 = vrot.slane %v856_v11, %v1127_v61 }
  0xd3   :  { %867 = vtanh.f32 %v243_v42  ;;  %v203_v52 = vpop.xlane.xlu1 %202  ;;  %v858_v14 = vpop.eup %857 }
  0xd4   :  { %v209_v53 = vpop.xlane.xlu0 %208  ;;  %869 = vtanh.f32 %v241_v41  ;;  %v244_v55 = vadd.f32 %v1059_v50, %v203_v52  ;;  %v860_v18 = vpop.eup %859  ;;  %v388_v41 = vsel %vm349_vm4, %v387_v23, %v383_v1  ;;  %v425_v44 = vrot.slane %v858_v14, %v1131_v63  ;;  %v574_v23 = vld [vmem:[%s1277_s5 + $0x18] sm:$0xff] }
  0xd5   :  { %v246_v56 = vadd.f32 %v1059_v50, %v209_v53  ;;  %871 = vtanh.f32 %v245_v46  ;;  %v434_v40 = vrot.slane %v860_v18, %v1123_v59 }
  0xd6   :  { %873 = vtanh.f32 %v244_v55  ;;  %v402_v55 = vsel %vm342_vm3, %v401_v34, %v397_v49  ;;  %v754_v34 = vld [vmem:[%s1278_s6] ss:$0 sm:$0xff] }
  0xd7   :  { %875 = vtanh.f32 %v246_v56  ;;  %v215_v2 = vpop.xlane.xlu1 %214  ;;  %v416_v56 = vsel %vm335_vm2, %v415_v36, %v411_v43  ;;  %v407_v60 = vsel %vm349_vm4, %v406_v38, %v402_v55 }
  0xd8   :  { %v212_v0 = vpop.xlane.xlu0 %211  ;;  %v248_v5 = vadd.f32 %v1059_v50, %v215_v2  ;;  %v862_v20 = vpop.eup %861  ;;  %v421_v62 = vsel %vm342_vm3, %v420_v39, %v416_v56  ;;  %v756_v39 = vld [vmem:[%s1280_s8] ss:$0 sm:$0xff] }
  0xd9   :  { %v247_v4 = vadd.f32 %v1059_v50, %v212_v0  ;;  %v341_v50 = vrot.slane %v1093_v30, %v1127_v61  ;;  %v439_v45 = vrot.slane %v862_v20, %v1127_v61  ;;  %v435_v0 = vsel %vm335_vm2, %v434_v40, %v430_v48 }
  0xda   :  { %v426_v3 = vsel %vm349_vm4, %v425_v44, %v421_v62 }
  0xdb   :  { %877 = vtanh.f32 %v247_v4  ;;  %v864_v24 = vpop.eup %863  ;;  %v343_v26 = vsel %vm342_vm3, %v341_v50, %v336_v22  ;;  %v440_v4 = vsel %vm342_vm3, %v439_v45, %v435_v0  ;;  %v575_v22 = vld [vmem:[%s1277_s5 + $0x20] sm:$0xff] }
  0xdc   :  { %879 = vtanh.f32 %v248_v5  ;;  %v866_v27 = vpop.eup %865  ;;  %v350_v30 = vsel %vm349_vm4, %v348_v17, %v343_v26  ;;  %v444_v51 = vrot.slane %v864_v24, %v1131_v63  ;;  %v573_v24 = vld [vmem:[%s1277_s5 + $0x10] sm:$0xff]  ;;  %v571_v26 = vld [vmem:[%s1277_s5] sm:$0xff] }
  0xdd   :  { %v453_v46 = vrot.slane %v866_v27, %v1123_v59  ;;  %v485_v6 = vsel %vm484_vm5, %v369_v31, %v350_v30  ;;  %v752_v27 = vld [vmem:[%s1276_s4] ss:$0 sm:$0xff] }
  0xde   :  { %v445_v8 = vsel %vm349_vm4, %v444_v51, %v440_v4  ;;  %v487_v11 = vsel %vm486_vm6, %v388_v41, %v485_v6 }
  0xdf   :  { %v489_v13 = vsel %vm488_vm7, %v407_v60, %v487_v11 }
  0xe0   :  { %v868_v32 = vpop.eup %867  ;;  %v491_v16 = vsel %vm490_vm8, %v426_v3, %v489_v13 }
  0xe1   :  { %v870_v37 = vpop.eup %869  ;;  %v458_v52 = vrot.slane %v868_v32, %v1127_v61  ;;  %v662_v32 = vld [vmem:[%s1279_s7 + $0x8] sm:$0xff] }
  0xe2   :  { %v872_v42 = vpop.eup %871  ;;  %v449_v54 = vrot.slane %v870_v37, %v1121_v58 }
  0xe3   :  { %v874_v47 = vpop.eup %873  ;;  %v468_v10 = vrot.slane %v872_v42, %v1121_v58  ;;  %v493_v58 = vsel %vm492_vm9, %v445_v8, %v491_v16 }
  0xe4   :  { %v876_v53 = vpop.eup %875  ;;  %v463_v57 = vrot.slane %v874_v47, %v1131_v63  ;;  %v454_v5 = vsel %vm335_vm2, %v453_v46, %v449_v54 }
  0xe5   :  { %v472_v2 = vrot.slane %v876_v53, %v1123_v59  ;;  %v459_v9 = vsel %vm342_vm3, %v458_v52, %v454_v5 }
  0xe6   :  { %v464_v59 = vsel %vm349_vm4, %v463_v57, %v459_v9 }
  0xe7   :  { %v473_v14 = vsel %vm335_vm2, %v472_v2, %v468_v10  ;;  %v495_v19 = vsel %vm494_vm10, %v464_v59, %v493_v58 }
  0xe8   :  { %v878_v7 = vpop.eup %877 }
  0xe9   :  { %v880_v12 = vpop.eup %879  ;;  %v477_v50 = vrot.slane %v878_v7, %v1127_v61  ;;  %v578_v61 = vld [vmem:[%s1277_s5 + $0x38] sm:$0xff] }
  0xea   :  { %v482_v15 = vrot.slane %v880_v12, %v1131_v63  ;;  %787 = vmatpush3.msra.mxu1 %v578_v61  ;;  %v577_v63 = vld [vmem:[%s1277_s5 + $0x30] sm:$0xff] }
  0xeb   :  { %v478_v17 = vsel %vm342_vm3, %v477_v50, %v473_v14  ;;  %788 = vmatprep.subr.mxu1 %v910_v35 }
  0xec   :  { %v483_v18 = vsel %vm349_vm4, %v482_v15, %v478_v17  ;;  %789 = vmatpush3.msra.mxu1 %v577_v63 }
  0xed   :  { %v497_v20 = vsel %vm496_vm11, %v483_v18, %v495_v19  ;;  %790 = vmatprep.subr.mxu1 %v910_v35 }
  0xee   :  { %784 = vmatmul.mubr.msk.f32.vlgmr.msra.gmra.mxu0 %vm119_vm0, %v497_v20  ;;  %791 = vmatpush3.msra.mxu1 %v576_v21 }
  0xef   :  { %809 = vmatprep.mubr.msk.f32.mxu0 %vm911_vm1, %v910_v35  ;;  %792 = vmatprep.subr.mxu1 %v910_v35 }
  0xf0   :  { %793 = vmatpush3.msra.mxu1 %v575_v22  ;;  %806 = vmatpush3.msra.mxu0 %v662_v32 }
  0xf1   :  { %794 = vmatprep.subr.mxu1 %v910_v35  ;;  %807 = vmatprep.subr.mxu0 %v910_v35 }
  0xf2   :  { %795 = vmatpush3.msra.mxu1 %v574_v23  ;;  %808 = vmatpush3.msra.mxu0 %v661_v33 }
  0xf3   :  { %796 = vmatprep.subr.mxu1 %v910_v35 }
  0xf4   :  { %797 = vmatpush3.msra.mxu1 %v573_v24 }
  0xf5   :  { %798 = vmatprep.subr.mxu1 %v910_v35 }
  0xf6   :  { %799 = vmatpush3.msra.mxu1 %v572_v25 }
  0xf7   :  { %800 = vmatprep.subr.mxu1 %v910_v35 }
  0xf8   :  { %801 = vmatpush3.msra.mxu1 %v571_v26 }
 0x1ae   :  { %v566_v28 = vpop.f32.mrf.mxu0 }
 0x1af   :  { %v567_v29 = vadd.f32 %v752_v27, %v566_v28 }
 0x1b0   :  { %v785_v30 = vpop.f32.mrf.mxu0 }
 0x1b1   :  { %881 = vtanh.f32 %v567_v29 }
 0x1be   :  { %v882_v31 = vpop.eup %881 }
 0x1bf   :  { %803 = vmatmul.mubr.msk.f32.vlgmr.msra.gmra.mxu1 %vm586_vm12, %v882_v31 }
 0x27f   :  { %v656_v36 = vpop.f32.mrf.mxu1 }
 0x280   :  { %v657_v1 = vadd.f32 %v754_v34, %v656_v36 }
 0x281   :  { %v804_v37 = vpop.f32.mrf.mxu1 }
 0x282   :  { %883 = vtanh.f32 %v657_v1 }
 0x28f   :  { %v884_v38 = vpop.eup %883 }
 0x290   :  { %810 = vmatmul.mubr.msk.f32.vlgmr.msra.gmra.mxu0 %vm670_vm13, %v884_v38 }
 0x350   :  { %v740_v40 = vpop.f32.mrf.mxu0 }
 0x351   :  { %v741_v41 = vadd.f32 %v756_v39, %v740_v40 }
 0x352   :  { %v811_v35 = vpop.f32.mrf.mxu0 }
 0x353   :  { %745 = vst.msk [vmem:[%s1281_s9] sm:$0xff] %vm744_vm14, %v741_v41 }
 0x354   :  { %750 = vsyncpa [#allocation4], 1 }

</bundles_post_ra>
